<compile_context>
chip_gen: v5e
topology: v5e:2x2
jax: 0.10.0
libtpu: 0.0.40
codegen_flags: <defaults>
</compile_context>

<pallas_src>
import functools

import jax
import jax.numpy as jnp
from jax.experimental import pallas as pl
from jax.experimental.pallas import tpu as pltpu


def _round_up(x, m):
    return (x + m - 1) // m * m


def cevi2_kernel(ui_ref, w1_ref, b1_ref, w2_ref, b2_ref,
                 wru_ref, wrz_ref, br_ref,
                 rating_ref, z_ref):
    # ui_ref: (TB, 2D) bf16 tile of cat([user_emb, item_emb])
    ui = ui_ref[...]

    # encode_user_item[0]: Linear(2D -> E) + ReLU  (single fused MXU matmul, f32 accum)
    h = jnp.dot(ui, w1_ref[...], preferred_element_type=jnp.float32) + b1_ref[...]
    h = jnp.maximum(h, 0.0)

    # encode_user_item[2]: Linear(E -> word_num) + Sigmoid (EUP); accum + elementwise in f32
    logits = (jnp.dot(h.astype(w2_ref.dtype), w2_ref[...],
                      preferred_element_type=jnp.float32) + b2_ref[...])
    z = jax.nn.sigmoid(logits)
    z_ref[...] = z                                     # lane-dense (TB, word_num) store

    # rating: Linear(D + word_num -> 1) on cat([user_emb, z]).
    # N=1 matmuls waste 127/128 (255/256) MXU lanes -> do them on the VPU + lane reduce.
    d = wru_ref.shape[1]
    ue = ui[:, :d].astype(jnp.float32)                 # user half of the concat tile
    r = (jnp.sum(ue * wru_ref[...], axis=-1, keepdims=True)
         + jnp.sum(z * wrz_ref[...], axis=-1, keepdims=True)
         + br_ref[0, 0])                               # scalar bias from SMEM
    rating_ref[...] = r


def _pick_batch_tile(batch, ui_dim, encode_n, word_num, vmem_budget_bytes=32 << 20):
    """Largest batch tile (multiple of 16 for bf16 sublane packing) fitting the VMEM budget."""
    resident = ((2 * ui_dim * encode_n + encode_n * word_num) * 2          # bf16 weights
                + (encode_n + word_num + ui_dim + word_num + 1) * 4)       # f32 biases / rating rows
    per_row = 2 * (2 * ui_dim * 2 + word_num * 4 + 4)                      # x2 for double-buffering
    tb = max(16, (vmem_budget_bytes - resident) // max(per_row, 1))
    tb = min(tb, 1024)
    tb = min(tb, _round_up(batch, 16))
    return max(16, (tb // 16) * 16)


@functools.partial(jax.jit, static_argnames=("tb",))
def cevi2_forward(user, item, params, *, tb=None):
    """user, item: int32 (B,) index vectors. Returns (rating_scores (B,1), z (B,word_num))."""
    emb_user = params["emb_user"]
    emb_item = params["emb_item"]
    D = emb_user.shape[1]
    E = params["w1"].shape[1]
    word_num = params["w2"].shape[1]
    B = user.shape[0]

    if tb is None:
        tb = _pick_batch_tile(B, D, E, word_num)
    Bp = _round_up(B, tb)
    if Bp != B:
        pad = Bp - B
        user = jnp.concatenate([user, jnp.zeros((pad,), user.dtype)])
        item = jnp.concatenate([item, jnp.zeros((pad,), item.dtype)])

    # Embedding gathers + concat in the wrapper; matmul operands cast to bf16 (halve HBM bytes).
    # TODO(synk): for very large B, fuse the gather into the kernel (scalar-prefetch indices +
    #             manual DMA gather) to save the extra HBM round-trip of the (B, 2D) activations.
    ue = jnp.take(emb_user, user, axis=0)
    ie = jnp.take(emb_item, item, axis=0)
    ui = jnp.concatenate([ue, ie], axis=1).astype(jnp.bfloat16)      # (Bp, 2D)

    w1 = params["w1"].astype(jnp.bfloat16)                           # (2D, E)
    w2 = params["w2"].astype(jnp.bfloat16)                           # (E, word_num)
    b1 = params["b1"].astype(jnp.float32)                            # (1, E)
    b2 = params["b2"].astype(jnp.float32)                            # (1, word_num)
    wru = params["wr"][:D].T.astype(jnp.float32)                     # (1, D)  rating weight rows
    wrz = params["wr"][D:].T.astype(jnp.float32)                     # (1, word_num)
    br = params["br"].reshape(1, 1).astype(jnp.float32)              # (1, 1) scalar -> SMEM

    grid = (Bp // tb,)
    resident = lambda i: (0, 0)                                      # weights fixed across tiles

    nbytes = lambda a: a.size * a.dtype.itemsize
    bytes_accessed = (nbytes(ui) + nbytes(w1) + nbytes(w2) + nbytes(b1) + nbytes(b2)
                      + nbytes(wru) + nbytes(wrz) + nbytes(br)
                      + Bp * word_num * 4 + Bp * 4)
    cost = pl.CostEstimate(
        flops=2 * Bp * (2 * D * E + E * word_num + (D + word_num)),
        transcendentals=Bp * word_num,                               # sigmoid
        bytes_accessed=bytes_accessed,
    )

    rating, z = pl.pallas_call(
        cevi2_kernel,
        grid=grid,
        out_shape=(
            jax.ShapeDtypeStruct((Bp, 1), jnp.float32),              # rating_scores
            jax.ShapeDtypeStruct((Bp, word_num), jnp.float32),       # z
        ),
        in_specs=[
            pl.BlockSpec((tb, 2 * D), lambda i: (i, 0)),             # ui tile (pipelined)
            pl.BlockSpec((2 * D, E), resident),                      # w1 (VMEM-resident)
            pl.BlockSpec((1, E), resident),                          # b1
            pl.BlockSpec((E, word_num), resident),                   # w2
            pl.BlockSpec((1, word_num), resident),                   # b2
            pl.BlockSpec((1, D), resident),                          # rating weight (user half)
            pl.BlockSpec((1, word_num), resident),                   # rating weight (z half)
            pl.BlockSpec(memory_space=pltpu.MemorySpace.SMEM),       # br scalar bias
        ],
        out_specs=(
            pl.BlockSpec((tb, 1), lambda i: (i, 0)),                 # rating (tiny masked store)
            pl.BlockSpec((tb, word_num), lambda i: (i, 0)),          # z (lane-dense)
        ),
        compiler_params=pltpu.CompilerParams(
            dimension_semantics=("parallel",),                       # megacore on v7x
            vmem_limit_bytes=64 * 1024 * 1024,
        ),
        cost_estimate=cost,
    )(ui, w1, b1, w2, b2, wru, wrz, br)

    return rating[:B], z[:B]


def init_params(key, *, word_num, user_num, item_num, ui_dim, encode_n):
    """Deterministic synthetic parameter init (matches shapes the nn.Module __init__ creates)."""
    ks = jax.random.split(key, 8)
    s = 0.1
    return dict(
        emb_user=s * jax.random.normal(ks[0], (user_num, ui_dim), jnp.float32),
        emb_item=s * jax.random.normal(ks[1], (item_num, ui_dim), jnp.float32),
        w1=s * jax.random.normal(ks[2], (2 * ui_dim, encode_n), jnp.float32),   # Linear(2D, E)
        b1=s * jax.random.normal(ks[3], (1, encode_n), jnp.float32),
        w2=s * jax.random.normal(ks[4], (encode_n, word_num), jnp.float32),     # Linear(E, W)
        b2=s * jax.random.normal(ks[5], (1, word_num), jnp.float32),
        wr=s * jax.random.normal(ks[6], (ui_dim + word_num, 1), jnp.float32),   # Linear(D+W, 1)
        br=s * jax.random.normal(ks[7], (1, 1), jnp.float32),
    )


def _reference(user, item, params, *, mixed):
    """Pure-JAX reference of the PyTorch forward.  mixed=True mirrors the kernel's bf16 operands."""
    ue = jnp.take(params["emb_user"], user, axis=0)
    ie = jnp.take(params["emb_item"], item, axis=0)
    cat = jnp.concatenate([ue, ie], axis=1)
    D = params["emb_user"].shape[1]
    if mixed:
        cat_m = cat.astype(jnp.bfloat16)
        w1 = params["w1"].astype(jnp.bfloat16)
        w2 = params["w2"].astype(jnp.bfloat16)
        ue_r = cat_m[:, :D].astype(jnp.float32)
    else:
        cat_m, w1, w2, ue_r = cat, params["w1"], params["w2"], ue
    h = jnp.maximum(jnp.dot(cat_m, w1, preferred_element_type=jnp.float32) + params["b1"], 0.0)
    z = jax.nn.sigmoid(jnp.dot(h.astype(w2.dtype), w2,
                               preferred_element_type=jnp.float32) + params["b2"])
    wr = params["wr"]
    r = ue_r @ wr[:D] + z @ wr[D:] + params["br"]
    return r, z


if __name__ == "__main__":
    # Small synthetic config (shapes consistent with the module's __init__)
    word_num = 128
    user_num = 16
    item_num = 16
    ui_embedding_dim = 32
    encode_tensor_n = 64

    key = jax.random.PRNGKey(0)
    kp, kidx = jax.random.split(key, 2)
    params = init_params(kp, word_num=word_num, user_num=user_num,
                         item_num=item_num, ui_dim=ui_embedding_dim,
                         encode_n=encode_tensor_n)

    # Case 1: batch=8 (padded to one 16-row tile).  Case 2: batch=48, 3 grid tiles of 16.
    for batch, tb in ((8, None), (48, 16)):
        ku, ki = jax.random.split(jax.random.fold_in(kidx, batch), 2)
        user = jax.random.randint(ku, (batch,), 0, user_num, dtype=jnp.int32)
        item = jax.random.randint(ki, (batch,), 0, item_num, dtype=jnp.int32)

        rating, z = jax.block_until_ready(cevi2_forward(user, item, params, tb=tb))

        r_mix, z_mix = _reference(user, item, params, mixed=True)    # same precision as kernel
        r_f32, z_f32 = _reference(user, item, params, mixed=False)   # pure-f32 PyTorch math

        assert rating.shape == (batch, 1) and z.shape == (batch, word_num)
        assert jnp.allclose(rating, r_mix, atol=1e-3, rtol=1e-3)
        assert jnp.allclose(z, z_mix, atol=1e-3, rtol=1e-3)
        assert jnp.allclose(rating, r_f32, atol=2e-2, rtol=2e-2)     # bf16-operand tolerance
        assert jnp.allclose(z, z_f32, atol=2e-2, rtol=2e-2)

    print("KERNEL_OK")
</pallas_src>

<mosaic_0001>
module attributes {stable_mosaic.version = 11 : i64} {
  func.func @cevi2_kernel(%arg0: i32, %arg1: memref<16x64xbf16, #tpu.memory_space<vmem>>, %arg2: memref<64x64xbf16, #tpu.memory_space<vmem>>, %arg3: memref<1x64xf32, #tpu.memory_space<vmem>>, %arg4: memref<64x128xbf16, #tpu.memory_space<vmem>>, %arg5: memref<1x128xf32, #tpu.memory_space<vmem>>, %arg6: memref<1x32xf32, #tpu.memory_space<vmem>>, %arg7: memref<1x128xf32, #tpu.memory_space<vmem>>, %arg8: memref<1x1xf32, #tpu.memory_space<smem>>, %arg9: memref<16x1xf32, #tpu.memory_space<vmem>>, %arg10: memref<16x128xf32, #tpu.memory_space<vmem>>) attributes {dimension_semantics = [#tpu.dimension_semantics<parallel>], iteration_bounds = array<i64: 1>, scalar_prefetch = 0 : i64, scratch_operands = 0 : i64, tpu.core_type = #tpu.core_type<tc>, window_params = [{transform_indices = @transform_0, window_bounds = array<i64: 16, 64>}, {pipeline_mode = #tpu.pipeline_mode<synchronous>, transform_indices = @transform_1, window_bounds = array<i64: 64, 64>}, {pipeline_mode = #tpu.pipeline_mode<synchronous>, transform_indices = @transform_2, window_bounds = array<i64: 1, 64>}, {pipeline_mode = #tpu.pipeline_mode<synchronous>, transform_indices = @transform_3, window_bounds = array<i64: 64, 128>}, {pipeline_mode = #tpu.pipeline_mode<synchronous>, transform_indices = @transform_4, window_bounds = array<i64: 1, 128>}, {pipeline_mode = #tpu.pipeline_mode<synchronous>, transform_indices = @transform_5, window_bounds = array<i64: 1, 32>}, {pipeline_mode = #tpu.pipeline_mode<synchronous>, transform_indices = @transform_6, window_bounds = array<i64: 1, 128>}, {transform_indices = @transform_7, window_bounds = array<i64: 1, 1>}, {transform_indices = @transform_8, window_bounds = array<i64: 16, 1>}, {transform_indices = @transform_9, window_bounds = array<i64: 16, 128>}]} {
    %c0 = arith.constant 0 : index
    %c0_0 = arith.constant 0 : index
    %0 = vector.load %arg1[%c0, %c0_0] : memref<16x64xbf16, #tpu.memory_space<vmem>>, vector<16x64xbf16>
    %c0_1 = arith.constant 0 : index
    %c0_2 = arith.constant 0 : index
    %1 = vector.load %arg2[%c0_1, %c0_2] : memref<64x64xbf16, #tpu.memory_space<vmem>>, vector<64x64xbf16>
    %cst = arith.constant dense<0.000000e+00> : vector<16x64xf32>
    %2 = tpu.matmul %0, %1, %cst {dimension_numbers = #tpu.dot_dimension_numbers<[1], [0], [0], [1], [0, 0, 1, 1], [], []>} : vector<16x64xbf16>, vector<64x64xbf16>, vector<16x64xf32> -> vector<16x64xf32>
    %c0_3 = arith.constant 0 : index
    %c0_4 = arith.constant 0 : index
    %3 = vector.load %arg3[%c0_3, %c0_4] : memref<1x64xf32, #tpu.memory_space<vmem>>, vector<1x64xf32>
    %4 = vector.broadcast %3 : vector<1x64xf32> to vector<16x64xf32>
    %5 = arith.addf %2, %4 : vector<16x64xf32>
    %cst_5 = arith.constant 0.000000e+00 : f32
    %6 = vector.broadcast %cst_5 : f32 to vector<16x64xf32>
    %7 = arith.maximumf %5, %6 : vector<16x64xf32>
    %8 = arith.truncf %7 : vector<16x64xf32> to vector<16x64xbf16>
    %c0_6 = arith.constant 0 : index
    %c0_7 = arith.constant 0 : index
    %9 = vector.load %arg4[%c0_6, %c0_7] : memref<64x128xbf16, #tpu.memory_space<vmem>>, vector<64x128xbf16>
    %cst_8 = arith.constant dense<0.000000e+00> : vector<16x128xf32>
    %10 = tpu.matmul %8, %9, %cst_8 {dimension_numbers = #tpu.dot_dimension_numbers<[1], [0], [0], [1], [0, 0, 1, 1], [], []>} : vector<16x64xbf16>, vector<64x128xbf16>, vector<16x128xf32> -> vector<16x128xf32>
    %c0_9 = arith.constant 0 : index
    %c0_10 = arith.constant 0 : index
    %11 = vector.load %arg5[%c0_9, %c0_10] : memref<1x128xf32, #tpu.memory_space<vmem>>, vector<1x128xf32>
    %12 = vector.broadcast %11 : vector<1x128xf32> to vector<16x128xf32>
    %13 = arith.addf %10, %12 : vector<16x128xf32>
    %14 = arith.negf %13 : vector<16x128xf32>
    %15 = math.exp %14 : vector<16x128xf32>
    %cst_11 = arith.constant 1.000000e+00 : f32
    %16 = vector.broadcast %cst_11 : f32 to vector<16x128xf32>
    %17 = arith.addf %16, %15 : vector<16x128xf32>
    %18 = arith.divf %16, %17 : vector<16x128xf32>
    %c0_12 = arith.constant 0 : index
    %c0_13 = arith.constant 0 : index
    %19 = vector.load %arg10[%c0_12, %c0_13] : memref<16x128xf32, #tpu.memory_space<vmem>>, vector<16x128xf32>
    tpu.vector_store %arg10[%c0_12, %c0_13], %18 {strides = array<i32>} : memref<16x128xf32, #tpu.memory_space<vmem>>, vector<16x128xf32>,
    %20 = vector.extract_strided_slice %0 {offsets = [0, 0], sizes = [16, 32], strides = [1, 1]} : vector<16x64xbf16> to vector<16x32xbf16>
    %21 = arith.extf %20 : vector<16x32xbf16> to vector<16x32xf32>
    %c0_14 = arith.constant 0 : index
    %c0_15 = arith.constant 0 : index
    %22 = vector.load %arg6[%c0_14, %c0_15] : memref<1x32xf32, #tpu.memory_space<vmem>>, vector<1x32xf32>
    %23 = vector.broadcast %22 : vector<1x32xf32> to vector<16x32xf32>
    %24 = arith.mulf %21, %23 : vector<16x32xf32>
    %cst_16 = arith.constant dense<0.000000e+00> : vector<16xf32>
    %25 = vector.multi_reduction <add>, %24, %cst_16 [1] : vector<16x32xf32> to vector<16xf32>
    %26 = vector.shape_cast %25 : vector<16xf32> to vector<16x1xf32>
    %c0_17 = arith.constant 0 : index
    %c0_18 = arith.constant 0 : index
    %27 = vector.load %arg7[%c0_17, %c0_18] : memref<1x128xf32, #tpu.memory_space<vmem>>, vector<1x128xf32>
    %28 = vector.broadcast %27 : vector<1x128xf32> to vector<16x128xf32>
    %29 = arith.mulf %18, %28 : vector<16x128xf32>
    %cst_19 = arith.constant dense<0.000000e+00> : vector<16xf32>
    %30 = vector.multi_reduction <add>, %29, %cst_19 [1] : vector<16x128xf32> to vector<16xf32>
    %31 = vector.shape_cast %30 : vector<16xf32> to vector<16x1xf32>
    %32 = arith.addf %26, %31 : vector<16x1xf32>
    %c0_20 = arith.constant 0 : index
    %c0_21 = arith.constant 0 : index
    %33 = memref.load %arg8[%c0_20, %c0_21] : memref<1x1xf32, #tpu.memory_space<smem>>
    %34 = vector.broadcast %33 : f32 to vector<16x1xf32>
    %35 = arith.addf %32, %34 : vector<16x1xf32>
    %c0_22 = arith.constant 0 : index
    %c0_23 = arith.constant 0 : index
    %36 = vector.load %arg9[%c0_22, %c0_23] : memref<16x1xf32, #tpu.memory_space<vmem>>, vector<16x1xf32>
    tpu.vector_store %arg9[%c0_22, %c0_23], %35 {strides = array<i32>} : memref<16x1xf32, #tpu.memory_space<vmem>>, vector<16x1xf32>,
    return
  }
  func.func @transform_0(%arg0: i32) -> (i32, i32) {
    %c0_i32 = arith.constant 0 : i32
    %c0_i32_0 = arith.constant 0 : i32
    return %arg0, %c0_i32 : i32, i32
  }
  func.func @transform_1(%arg0: i32) -> (i32, i32) {
    %c0_i32 = arith.constant 0 : i32
    %c0_i32_0 = arith.constant 0 : i32
    %c0_i32_1 = arith.constant 0 : i32
    return %c0_i32, %c0_i32_0 : i32, i32
  }
  func.func @transform_2(%arg0: i32) -> (i32, i32) {
    %c0_i32 = arith.constant 0 : i32
    %c0_i32_0 = arith.constant 0 : i32
    %c0_i32_1 = arith.constant 0 : i32
    return %c0_i32, %c0_i32_0 : i32, i32
  }
  func.func @transform_3(%arg0: i32) -> (i32, i32) {
    %c0_i32 = arith.constant 0 : i32
    %c0_i32_0 = arith.constant 0 : i32
    %c0_i32_1 = arith.constant 0 : i32
    return %c0_i32, %c0_i32_0 : i32, i32
  }
  func.func @transform_4(%arg0: i32) -> (i32, i32) {
    %c0_i32 = arith.constant 0 : i32
    %c0_i32_0 = arith.constant 0 : i32
    %c0_i32_1 = arith.constant 0 : i32
    return %c0_i32, %c0_i32_0 : i32, i32
  }
  func.func @transform_5(%arg0: i32) -> (i32, i32) {
    %c0_i32 = arith.constant 0 : i32
    %c0_i32_0 = arith.constant 0 : i32
    %c0_i32_1 = arith.constant 0 : i32
    return %c0_i32, %c0_i32_0 : i32, i32
  }
  func.func @transform_6(%arg0: i32) -> (i32, i32) {
    %c0_i32 = arith.constant 0 : i32
    %c0_i32_0 = arith.constant 0 : i32
    %c0_i32_1 = arith.constant 0 : i32
    return %c0_i32, %c0_i32_0 : i32, i32
  }
  func.func @transform_7(%arg0: i32) -> (i32, i32) {
    %c0_i32 = arith.constant 0 : i32
    %c0_i32_0 = arith.constant 0 : i32
    %c0_i32_1 = arith.constant 0 : i32
    return %c0_i32, %c0_i32_0 : i32, i32
  }
  func.func @transform_8(%arg0: i32) -> (i32, i32) {
    %c0_i32 = arith.constant 0 : i32
    %c0_i32_0 = arith.constant 0 : i32
    return %arg0, %c0_i32 : i32, i32
  }
  func.func @transform_9(%arg0: i32) -> (i32, i32) {
    %c0_i32 = arith.constant 0 : i32
    %c0_i32_0 = arith.constant 0 : i32
    return %arg0, %c0_i32 : i32, i32
  }
}

</mosaic_0001>

<bundles_post_ra>
// kernel: cevi2_forward.1
= control target key start
LH: loop header
LB: loop body
LE: loop exit
PB: predicated region body
PF: predicated region fallthrough
CT: control target
= control target key end

     0   :  { %vm76_vm0 = vcmask 523264   ;;  %vm198_vm1 = vcmask 261120   ;;  %vm221_vm10 = vcmask 7168   ;;  %s402_s1 = inlined_call_operand.vmem [shape: bf16[64,64], index: 1, kind: input, shape index: {}]   ;;  %s403_s2 = inlined_call_operand.vmem [shape: f32[1,64], index: 2, kind: input, shape index: {}]   ;;  %s404_s0 = inlined_call_operand.vmem [shape: bf16[16,64], index: 0, kind: input, shape index: {}]   ;;  %s405_s4 = inlined_call_operand.vmem [shape: f32[1,128], index: 4, kind: input, shape index: {}]   ;;  %s406_s3 = inlined_call_operand.vmem [shape: bf16[64,128], index: 3, kind: input, shape index: {}]   ;;  %s407_s6 = inlined_call_operand.vmem [shape: f32[1,128], index: 6, kind: input, shape index: {}]   ;;  %s408_s5 = inlined_call_operand.vmem [shape: f32[1,32], index: 5, kind: input, shape index: {}]   ;;  %s409_s9 = inlined_call_operand.vmem [shape: f32[16,128], index: 9, kind: output, shape index: {1}]   ;;  %s410_s7 = inlined_call_operand.<no memory space> [shape: f32[1,1], index: 7, kind: input, shape index: {}]   ;;  %s411_s8 = inlined_call_operand.vmem [shape: f32[16,1], index: 8, kind: output, shape index: {0}]  }
   0x1   :  { %v276_v0 = vld [vmem:[%s402_s1 + $0x18] sm:$0xff]  ;;  %v275_v1 = vld [vmem:[%s402_s1 + $0x10] sm:$0xff]  ;;  %v274_v2 = vld [vmem:[%s402_s1 + $0x8] sm:$0xff]  ;;  %v218_v61 = vstv %s410_s7 }
   0x2   :  { %84 = vmatpush.bf16.msra.mxu0 %v276_v0  ;;  %v273_v3 = vld [vmem:[%s402_s1] sm:$0xff]  ;;  %v280_v5 = vld [vmem:[%s406_s3 + $0x18] sm:$0xff]  ;;  %v279_v6 = vld [vmem:[%s406_s3 + $0x10] sm:$0xff] }
   0x3   :  { %v272_v4 = vld [vmem:[%s404_s0] sm:$0xff]  ;;  %140 = vmatpush.bf16.msra.mxu1 %v280_v5  ;;  %v278_v7 = vld [vmem:[%s406_s3 + $0x8] sm:$0xff] }
   0x4   :  { %v277_v8 = vld [vmem:[%s406_s3] sm:$0xff] }
   0x5   :  { %v281_v10 = vld [vmem:[%s403_s2] ss:$0 sm:$0xff] }
   0x6   :  { %85 = vmatpush.bf16.msra.mxu0 %v275_v1  ;;  %v33_v17 = vld [vmem:[%s404_s0] sm:$0xff]  }
   0x7   :  { %141 = vmatpush.bf16.msra.mxu1 %v279_v6  ;;  %v190_v18 = vunpack.c.l.bf16 %v33_v17  ;;  %v284_v19 = vld [vmem:[%s408_s5] ss:$0 sm:$0xff]  ;;  %v191_v26 = vunpack.c.h.bf16 %v33_v17 }
   0x8   :  { %v282_v20 = vld [vmem:[%s405_s4] ss:$0 sm:$0xff] }
   0x9   :  { %v196_v21 = vmul.f32 %v284_v19, %v190_v18  ;;  %v197_v27 = vmul.f32 %v284_v19, %v191_v26  ;;  %v283_v43 = vld [vmem:[%s407_s6] ss:$0 sm:$0xff] }
   0xa   :  { %86 = vmatpush.bf16.msra.mxu0 %v274_v2 }
   0xb   :  { %142 = vmatpush.bf16.msra.mxu1 %v278_v7  ;;  %v199_v23 = vsel %vm198_vm1, %v196_v21, 0.0  ;;  %v202_v29 = vsel %vm198_vm1, %v197_v27, 0.0 }
   0xc   :  { %200 = vadd.xlane.f32.xlu0 %v199_v23 }
   0xe   :  { %87 = vmatpush.bf16.msra.mxu0 %v273_v3 }
   0xf   :  { %143 = vmatpush.bf16.msra.mxu1 %v277_v8 }
  0x11   :  { %252 = vmatmul.msk.bf16.vlgmr.msra.gmra.mxu0 %vm76_vm0, %v272_v4 }
  0x14   :  { %203 = vadd.xlane.f32.xlu0 %v202_v29 }
  0x7f   :  { %v201_v59 = vpop.xlane.xlu0 %200 }
  0x87   :  { %v204_v0 = vpop.xlane.xlu0 %203 }
  0x8e   :  { %v89_v9 = vpop.f32.mrf.mxu0 }
  0x8f   :  { %v90_v11 = vadd.f32 %v281_v10, %v89_v9 }
  0x91   :  { %v94_v14 = vmax.f32 %v90_v11, 0.0 }
  0x96   :  { %v91_v12 = vpop.f32.mrf.mxu0 }
  0x97   :  { %v92_v13 = vadd.f32 %v281_v10, %v91_v12 }
  0x99   :  { %v95_v15 = vmax.f32 %v92_v13, 0.0 }
  0x9b   :  { %v96_v16 = vpack.c.bf16 %v95_v15, %v94_v14 }
  0x9d   :  { %269 = vmatmul.msk.bf16.vlgmr.msra.gmra.mxu1 %vm76_vm0, %v96_v16 }
 0x11a   :  { %v145_v22 = vpop.f32.mrf.mxu1 }
 0x11b   :  { %v146_v24 = vadd.f32 %v282_v20, %v145_v22 }
 0x11d   :  { %v270_v25 = vmul.f32 -1.442695, %v146_v24 }
 0x11f   :  { %285 = vpow2.f32 %v270_v25 }
 0x122   :  { %v147_v28 = vpop.f32.mrf.mxu1 }
 0x123   :  { %v148_v30 = vadd.f32 %v282_v20, %v147_v28 }
 0x125   :  { %v286_v31 = vpop.eup %285  ;;  %v271_v32 = vmul.f32 -1.442695, %v148_v30 }
 0x126   :  { %v156_v33 = vadd.f32 1.0, %v286_v31 }
 0x127   :  { %287 = vpow2.f32 %v271_v32 }
 0x128   :  { %289 = vrcp.f32 %v156_v33  ;;  %v169_v39 = vand.u32 2147483648, %v156_v33  ;;  %v167_v41 = vand.u32 2147483647, %v156_v33  ;;  %vm163_vm3 = vweird.f32 %v156_v33 }
 0x12a   :  { %v170_v45 = vor.u32 1.1754944e-38, %v169_v39  ;;  %vm168_vm5 = vcmp.eq.f32.partialorder %v167_v41, 8.507059e+37 }
 0x12d   :  { %v288_v34 = vpop.eup %287 }
 0x12e   :  { %v290_v35 = vpop.eup %289  ;;  %v157_v36 = vadd.f32 1.0, %v288_v34 }
 0x12f   :  { %v159_v37 = vmul.f32 %v290_v35, %v156_v33  ;;  %vm164_vm2 = vweird.f32 %v290_v35 }
 0x130   :  { %291 = vrcp.f32 %v157_v36  ;;  %vm165_vm4 = vmor %vm163_vm3, %vm164_vm2  ;;  %v184_v51 = vand.u32 2147483648, %v157_v36  ;;  %v182_v53 = vand.u32 2147483647, %v157_v36  ;;  %vm178_vm7 = vweird.f32 %v157_v36 }
 0x131   :  { %v160_v38 = vsub.f32 1.0, %v159_v37 }
 0x132   :  { %v185_v55 = vor.u32 1.1754944e-38, %v184_v51  ;;  %vm183_vm9 = vcmp.eq.f32.partialorder %v182_v53, 8.507059e+37 }
 0x133   :  { %v161_v40 = vmul.f32 %v290_v35, %v160_v38 }
 0x135   :  { %v162_v42 = vadd.f32 %v290_v35, %v161_v40 }
 0x136   :  { %v292_v44 = vpop.eup %291 }
 0x137   :  { %v166_v46 = vsel %vm165_vm4, %v290_v35, %v162_v42  ;;  %v174_v47 = vmul.f32 %v292_v44, %v157_v36  ;;  %vm179_vm6 = vweird.f32 %v292_v44 }
 0x138   :  { %v171_v48 = vsel %vm168_vm5, %v170_v45, %v166_v46  ;;  %vm180_vm8 = vmor %vm178_vm7, %vm179_vm6 }
 0x139   :  { %v209_v49 = vmul.f32 %v283_v43, %v171_v48  ;;  %188 = vst [vmem:[%s409_s9] sm:$0xff] %v171_v48  ;;  %v175_v50 = vsub.f32 1.0, %v174_v47 }
 0x13b   :  { %211 = vadd.xlane.f32.xlu1 %v209_v49  ;;  %v176_v52 = vmul.f32 %v292_v44, %v175_v50 }
 0x13d   :  { %v177_v54 = vadd.f32 %v292_v44, %v176_v52 }
 0x13f   :  { %v181_v56 = vsel %vm180_vm8, %v292_v44, %v177_v54 }
 0x140   :  { %v186_v57 = vsel %vm183_vm9, %v185_v55, %v181_v56 }
 0x141   :  { %189 = vst [vmem:[%s409_s9 + $0x8] sm:$0xff] %v186_v57  ;;  %v210_v58 = vmul.f32 %v283_v43, %v186_v57 }
 0x143   :  { %213 = vadd.xlane.f32.xlu1 %v210_v58 }
 0x1ae   :  { %v212_v60 = vpop.xlane.xlu1 %211 }
 0x1af   :  { %v215_v62 = vadd.f32 %v212_v60, %v201_v59 }
 0x1b1   :  { %v219_v63 = vadd.f32 %v218_v61, %v215_v62 }
 0x1b3   :  { %222 = vst.msk [vmem:[%s411_s8] sm:$0xff] %vm221_vm10, %v219_v63 }
 0x1b6   :  { %v214_v1 = vpop.xlane.xlu1 %213 }
 0x1b7   :  { %v216_v2 = vadd.f32 %v214_v1, %v204_v0 }
 0x1b9   :  { %v220_v3 = vadd.f32 %v218_v61, %v216_v2 }
 0x1bb   :  { %223 = vst.msk [vmem:[%s411_s8 + $0x8] sm:$0xff] %vm221_vm10, %v220_v3 }

</bundles_post_ra>
